<compile_context>
chip_gen: v6e
topology: v6e:2x2x1
jax: 0.10.0
libtpu: 0.0.40
codegen_flags: <defaults>
</compile_context>

<pallas_src>
import functools
import math

import jax
import jax.numpy as jnp
from jax.experimental import pallas as pl
from jax.experimental.pallas import tpu as pltpu

_LANE = 128
_MAX_BATCH_UNROLL = 32  # cap trace-time unrolling of the per-batch stage-2 loop


def _round_up(v, m):
    return ((v + m - 1) // m) * m


def _sublane_multiple(dtype):
    itemsize = jnp.dtype(dtype).itemsize
    return 8 * max(1, 4 // itemsize)  # f32 -> 8, bf16 -> 16, int8/fp8 -> 32


def _vmem_block_bytes(shape, dtype):
    """(sublane, lane)-padded VMEM footprint of one buffer."""
    itemsize = jnp.dtype(dtype).itemsize
    if len(shape) < 2:
        n = 1
        for d in shape:
            n *= int(d)
        return _round_up(max(n, 1), _LANE) * itemsize
    lead = 1
    for d in shape[:-2]:
        lead *= int(d)
    sub = _round_up(int(shape[-2]), _sublane_multiple(dtype))
    lane = _round_up(int(shape[-1]), _LANE)
    return lead * sub * lane * itemsize


def _vmem_capacity_bytes(default=64 * 1024 * 1024):
    # v5e/v6e: 128 MiB per TensorCore; v7x: 64 MiB.  Fall back to the smallest.
    try:
        return int(pltpu.get_tpu_info().vmem_capacity_bytes)
    except Exception:
        return default


def _sepnet_kernel(x_ref, a_ref, b_ref, out_ref, *, compute_dtype, fold_stage1):
    # x_ref  : (B_BLK, C, HW)        block of batches, in the caller's dtype
    # a_ref  : (A_W, HW)             shared across all grid steps (compute_dtype)
    # b_ref  : (C, B_H_pad)          shared, lane-padded to 128 (compute_dtype)
    # out_ref: (B_BLK, A_W, B_H_pad)
    bb, c, hw = x_ref.shape
    a = a_ref[...]
    b = b_ref[...]
    x_blk = x_ref[...]
    if x_blk.dtype != compute_dtype:
        # Cast on the VPU under the input DMA: x is read from HBM exactly once
        # in its original dtype (no wrapper-side astype pass over x).
        x_blk = x_blk.astype(compute_dtype)

    def stage2(temp_i):
        # out_i = temp_i @ B : (A_W, C) @ (C, B_H_pad) -> (A_W, B_H_pad)
        if temp_i.dtype != b.dtype:
            temp_i = temp_i.astype(b.dtype)
        return jax.lax.dot_general(
            temp_i, b,
            dimension_numbers=(((1,), (0,)), ((), ())),
            preferred_element_type=jnp.float32)

    if fold_stage1:
        # One big MXU matmul for the whole batch block:
        #   temp_all = A @ x_flat^T : (A_W, HW) x (B_BLK*C, HW)^T -> (A_W, B_BLK*C)
        # Contracting the minor HW dim of BOTH operands is the native
        # rhs-transposed matmul (no XLU transposes), and the intermediate comes
        # out lane-dense along B_BLK*C.
        x_flat = x_blk.reshape(bb * c, hw)  # free collapse (C % sublane == 0)
        temp_all = jax.lax.dot_general(
            a, x_flat,
            dimension_numbers=(((1,), (1,)), ((), ())),
            preferred_element_type=jnp.float32)
        if temp_all.dtype != b.dtype:       # one cast for the whole block
            temp_all = temp_all.astype(b.dtype)
        for i in range(bb):                 # static lane slices, per-batch GEMM
            out_ref[i] = stage2(temp_all[:, i * c:(i + 1) * c]).astype(out_ref.dtype)
    else:
        # Fallback: per-batch stage 1 when collapsing (B_BLK, C) would require
        # a real relayout.  (A per-shape contraction-order dispatch — doing
        # x^T @ B first when B_H << HW — could be added here; minor FLOP win.)
        for i in range(bb):
            temp_i = jax.lax.dot_general(
                a, x_blk[i],
                dimension_numbers=(((1,), (1,)), ((), ())),
                preferred_element_type=jnp.float32)
            out_ref[i] = stage2(temp_i).astype(out_ref.dtype)


def sepnet_linear(x, a_ref, b_ref, *, batch_block=None, compute_dtype=jnp.float32):
    """Pallas implementation of SepnetLinear.forward.

    Args:
      x:     [batch, C, HW]
      a_ref: [A_W, A_H]  with A_H == HW
      b_ref: [B_W, B_H]  with B_W == C
      batch_block: batches per grid step (None -> VMEM-budget heuristic;
        always clamped to a divisor of batch so x is never padded).
      compute_dtype: dtype fed to the MXU (f32 default = module semantics;
        bfloat16 is an opt-in fast path; accumulation is always f32).
    Returns:
      (out, a_ref, b_ref) with out: [batch, A_W, B_H] in x.dtype.
    """
    batch, c, hw = x.shape
    a_w, a_h = a_ref.shape
    b_w, b_h = b_ref.shape
    assert a_h == hw, "A_H must equal input_hw (x.shape[2])"
    assert b_w == c, "B_W must equal input_channels (x.shape[1])"

    out_dtype = x.dtype
    b_h_pad = _round_up(b_h, _LANE)  # lane-dense (unmasked) output stores

    # A/B are tiny and shared across the whole grid: cast/pad them once here.
    # x is deliberately NOT cast or padded in the wrapper (that would add full
    # extra HBM passes over the big input on a memory-bound op).
    ac = a_ref.astype(compute_dtype)
    bc = b_ref.astype(compute_dtype)
    if b_h_pad != b_h:
        bc = jnp.pad(bc, ((0, 0), (0, b_h_pad - b_h)))

    def footprint(bb):
        # Double-buffered pipeline copies of the windowed operands plus the
        # folded f32 stage-1 intermediate and a per-batch f32 stage-2 result.
        return (2 * _vmem_block_bytes((bb, c, hw), x.dtype)
                + 2 * _vmem_block_bytes((bb, a_w, b_h_pad), out_dtype)
                + 2 * _vmem_block_bytes((a_w, hw), compute_dtype)
                + 2 * _vmem_block_bytes((c, b_h_pad), compute_dtype)
                + 2 * _vmem_block_bytes((a_w, bb * c), jnp.float32)
                + 2 * _vmem_block_bytes((a_w, b_h_pad), jnp.float32))

    vmem_cap = _vmem_capacity_bytes()          # 64 MiB (v7x) / 128 MiB (v5e/v6e)
    budget = max(8 << 20, (vmem_cap * 6) // 10)

    if batch_block is None:
        # Largest divisor of batch whose footprint fits the per-generation VMEM
        # budget: fewest, biggest grid steps amortize the ~0.35 us per-step
        # overhead (single-TC v5e/v6e want grid=(1,) when everything fits; on
        # v7x the "parallel" axis is sharded across the 2 TensorCores).
        batch_block = 1
        for d in range(1, min(batch, _MAX_BATCH_UNROLL) + 1):
            if batch % d == 0 and footprint(d) <= budget:
                batch_block = d
    else:
        batch_block = max(1, min(int(batch_block), batch))
        while batch % batch_block != 0:  # never materialize a padded copy of x
            batch_block -= 1
    grid_b = batch // batch_block

    # Fold stage 1 across the batch block only when the collapse is free.
    fold_stage1 = (batch_block == 1) or (c % _sublane_multiple(x.dtype) == 0)

    fp = footprint(batch_block)
    vmem_limit = min(max(32 << 20, fp + (8 << 20)),
                     max(16 << 20, vmem_cap - (4 << 20)))

    kernel = functools.partial(_sepnet_kernel,
                               compute_dtype=compute_dtype,
                               fold_stage1=fold_stage1)

    out_padded = pl.pallas_call(
        kernel,
        out_shape=jax.ShapeDtypeStruct((batch, a_w, b_h_pad), out_dtype),
        grid_spec=pltpu.PrefetchScalarGridSpec(
            num_scalar_prefetch=0,
            grid=(grid_b,),
            in_specs=[
                pl.BlockSpec((batch_block, c, hw), lambda i: (i, 0, 0)),
                # Constant index_map: same A/B block every grid step (fetched
                # once; default double-buffering kept for safety — see header).
                pl.BlockSpec((a_w, hw), lambda i: (0, 0)),
                pl.BlockSpec((c, b_h_pad), lambda i: (0, 0)),
            ],
            out_specs=pl.BlockSpec((batch_block, a_w, b_h_pad),
                                   lambda i: (i, 0, 0)),
        ),
        compiler_params=pltpu.CompilerParams(
            dimension_semantics=("parallel",),
            vmem_limit_bytes=int(vmem_limit),
        ),
    )(x, ac, bc)

    out = out_padded[:, :, :b_h] if b_h_pad != b_h else out_padded
    return out, a_ref, b_ref


def kaiming_uniform_a_sqrt5(key, shape, dtype=jnp.float32):
    """torch.nn.init.kaiming_uniform_(t, a=sqrt(5)) for a 2-D tensor:
    fan_in = shape[1]; bound = 1/sqrt(fan_in)."""
    fan_in = shape[1]
    bound = 1.0 / math.sqrt(fan_in)
    return jax.random.uniform(key, shape, dtype, minval=-bound, maxval=bound)


if __name__ == "__main__":
    # Small shapes consistent with the module:
    #   x: [batch=2, input_channels=8, input_hw=16]
    #   A_ref: [A_W=32, A_H=16], B_ref: [B_W=8, B_H=8]
    batch, c, hw = 2, 8, 16
    a_w, a_h = 32, hw
    b_w, b_h = c, 8

    key = jax.random.PRNGKey(0)
    kx, ka, kb = jax.random.split(key, 3)

    x = jax.random.normal(kx, (batch, c, hw), dtype=jnp.float32)
    A_ref = kaiming_uniform_a_sqrt5(ka, (a_w, a_h))
    B_ref = kaiming_uniform_a_sqrt5(kb, (b_w, b_h))

    # Plain-JAX reference (exact module math, f32, highest precision).
    hi = jax.lax.Precision.HIGHEST
    temp32 = jnp.einsum("bch,ah->bca", x, A_ref, precision=hi)   # bmm(x, A^T)
    ref_f32 = jnp.einsum("bca,cd->bad", temp32, B_ref, precision=hi)

    # 1) Default f32 path: matches module semantics, tight check.
    out, A_out, B_out = sepnet_linear(x, A_ref, B_ref)
    out = jax.block_until_ready(out)
    assert out.shape == (batch, a_w, b_h)
    assert A_out is A_ref and B_out is B_ref
    assert jnp.allclose(out, ref_f32, atol=2e-3, rtol=2e-3)

    # 2) Opt-in bf16 MXU fast path: loose check against the f32 reference.
    out_bf, _, _ = sepnet_linear(x, A_ref, B_ref, compute_dtype=jnp.bfloat16)
    out_bf = jax.block_until_ready(out_bf)
    assert out_bf.shape == (batch, a_w, b_h)
    assert jnp.allclose(out_bf, ref_f32, atol=1e-1, rtol=1e-1)

    print("KERNEL_OK")
</pallas_src>

<mosaic_0001>
module attributes {stable_mosaic.version = 11 : i64} {
  func.func @_sepnet_kernel(%arg0: i32, %arg1: memref<2x8x16xf32, #tpu.memory_space<vmem>>, %arg2: memref<32x16xf32, #tpu.memory_space<vmem>>, %arg3: memref<8x128xf32, #tpu.memory_space<vmem>>, %arg4: memref<2x32x128xf32, #tpu.memory_space<vmem>>) attributes {dimension_semantics = [#tpu.dimension_semantics<parallel>], iteration_bounds = array<i64: 1>, scalar_prefetch = 0 : i64, scratch_operands = 0 : i64, tpu.core_type = #tpu.core_type<tc>, window_params = [{transform_indices = @transform_0, window_bounds = array<i64: 2, 8, 16>}, {pipeline_mode = #tpu.pipeline_mode<synchronous>, transform_indices = @transform_1, window_bounds = array<i64: 32, 16>}, {pipeline_mode = #tpu.pipeline_mode<synchronous>, transform_indices = @transform_2, window_bounds = array<i64: 8, 128>}, {transform_indices = @transform_3, window_bounds = array<i64: 2, 32, 128>}]} {
    %c0 = arith.constant 0 : index
    %c0_0 = arith.constant 0 : index
    %0 = vector.load %arg2[%c0, %c0_0] : memref<32x16xf32, #tpu.memory_space<vmem>>, vector<32x16xf32>
    %c0_1 = arith.constant 0 : index
    %c0_2 = arith.constant 0 : index
    %1 = vector.load %arg3[%c0_1, %c0_2] : memref<8x128xf32, #tpu.memory_space<vmem>>, vector<8x128xf32>
    %c0_3 = arith.constant 0 : index
    %c0_4 = arith.constant 0 : index
    %c0_5 = arith.constant 0 : index
    %2 = vector.load %arg1[%c0_3, %c0_4, %c0_5] : memref<2x8x16xf32, #tpu.memory_space<vmem>>, vector<2x8x16xf32>
    %3 = vector.shape_cast %2 : vector<2x8x16xf32> to vector<16x16xf32>
    %cst = arith.constant dense<0.000000e+00> : vector<32x16xf32>
    %4 = tpu.matmul %0, %3, %cst {dimension_numbers = #tpu.dot_dimension_numbers<[1], [1], [0], [0], [0, 0, 1, 0], [], []>} : vector<32x16xf32>, vector<16x16xf32>, vector<32x16xf32> -> vector<32x16xf32>
    %5 = vector.extract_strided_slice %4 {offsets = [0, 0], sizes = [32, 8], strides = [1, 1]} : vector<32x16xf32> to vector<32x8xf32>
    %cst_6 = arith.constant dense<0.000000e+00> : vector<32x128xf32>
    %6 = tpu.matmul %5, %1, %cst_6 {dimension_numbers = #tpu.dot_dimension_numbers<[1], [0], [0], [1], [0, 0, 1, 1], [], []>} : vector<32x8xf32>, vector<8x128xf32>, vector<32x128xf32> -> vector<32x128xf32>
    %c0_7 = arith.constant 0 : index
    %c0_8 = arith.constant 0 : index
    %c0_9 = arith.constant 0 : index
    %7 = vector.load %arg4[%c0_7, %c0_8, %c0_9] : memref<2x32x128xf32, #tpu.memory_space<vmem>>, vector<1x32x128xf32>
    %8 = vector.shape_cast %7 : vector<1x32x128xf32> to vector<32x128xf32>
    %9 = vector.shape_cast %6 : vector<32x128xf32> to vector<1x32x128xf32>
    tpu.vector_store %arg4[%c0_7, %c0_8, %c0_9], %9 {strides = array<i32>} : memref<2x32x128xf32, #tpu.memory_space<vmem>>, vector<1x32x128xf32>,
    %10 = vector.extract_strided_slice %4 {offsets = [0, 8], sizes = [32, 8], strides = [1, 1]} : vector<32x16xf32> to vector<32x8xf32>
    %cst_10 = arith.constant dense<0.000000e+00> : vector<32x128xf32>
    %11 = tpu.matmul %10, %1, %cst_10 {dimension_numbers = #tpu.dot_dimension_numbers<[1], [0], [0], [1], [0, 0, 1, 1], [], []>} : vector<32x8xf32>, vector<8x128xf32>, vector<32x128xf32> -> vector<32x128xf32>
    %c1 = arith.constant 1 : index
    %c0_11 = arith.constant 0 : index
    %c0_12 = arith.constant 0 : index
    %12 = vector.load %arg4[%c1, %c0_11, %c0_12] : memref<2x32x128xf32, #tpu.memory_space<vmem>>, vector<1x32x128xf32>
    %13 = vector.shape_cast %12 : vector<1x32x128xf32> to vector<32x128xf32>
    %14 = vector.shape_cast %11 : vector<32x128xf32> to vector<1x32x128xf32>
    tpu.vector_store %arg4[%c1, %c0_11, %c0_12], %14 {strides = array<i32>} : memref<2x32x128xf32, #tpu.memory_space<vmem>>, vector<1x32x128xf32>,
    return
  }
  func.func @transform_0(%arg0: i32) -> (i32, i32, i32) {
    %c0_i32 = arith.constant 0 : i32
    %c0_i32_0 = arith.constant 0 : i32
    %c0_i32_1 = arith.constant 0 : i32
    return %arg0, %c0_i32, %c0_i32_0 : i32, i32, i32
  }
  func.func @transform_1(%arg0: i32) -> (i32, i32) {
    %c0_i32 = arith.constant 0 : i32
    %c0_i32_0 = arith.constant 0 : i32
    %c0_i32_1 = arith.constant 0 : i32
    return %c0_i32, %c0_i32_0 : i32, i32
  }
  func.func @transform_2(%arg0: i32) -> (i32, i32) {
    %c0_i32 = arith.constant 0 : i32
    %c0_i32_0 = arith.constant 0 : i32
    %c0_i32_1 = arith.constant 0 : i32
    return %c0_i32, %c0_i32_0 : i32, i32
  }
  func.func @transform_3(%arg0: i32) -> (i32, i32, i32) {
    %c0_i32 = arith.constant 0 : i32
    %c0_i32_0 = arith.constant 0 : i32
    %c0_i32_1 = arith.constant 0 : i32
    return %arg0, %c0_i32, %c0_i32_0 : i32, i32, i32
  }
}

</mosaic_0001>

<bundles_post_ra>
// kernel: tpu_custom_call.1
= control target key start
LH: loop header
LB: loop body
LE: loop exit
PB: predicated region body
PF: predicated region fallthrough
CT: control target
= control target key end

     0   :  { %vm22_vm0 = vcmask 130048   ;;  %s488_s0 = inlined_call_operand.vmem [shape: f32[2,8,16], index: 0, kind: input, shape index: {}]   ;;  %s489_s1 = inlined_call_operand.vmem [shape: f32[32,16], index: 1, kind: input, shape index: {}]   ;;  %s490_s2 = inlined_call_operand.vmem [shape: f32[8,128], index: 2, kind: input, shape index: {}]   ;;  %s491_s3 = inlined_call_operand.hbm [shape: f32[2,32,128], index: 3, kind: output, shape index: {}]  }
   0x1   :  { %v21_v0 = vld [vmem:[%s488_s0 + $0x8] sm:$0xff]  ;;  %v20_v1 = vld [vmem:[%s488_s0] sm:$0xff] }
   0x2   :  { %v15_v2 = vld [vmem:[%s489_s1] sm:$0xff]  ;;  %380 = vmatprep.subr.msk.mxu0 %vm22_vm0, %v21_v0 }
   0x3   :  { %384 = vmatprep.mubr.msk.f32.mxu0 %vm22_vm0, %v15_v2  ;;  %381 = vmatpush3.xpose.msk.msra.mxu0 %vm22_vm0, %v21_v0 }
   0x4   :  { %8 = vsyncpa [#allocation3], 0  ;;  %382 = vmatprep.subr.msk.mxu0 %vm22_vm0, %v20_v1  ;;  %v16_v3 = vld [vmem:[%s489_s1 + $0x8] sm:$0xff]  ;;  %v17_v4 = vld [vmem:[%s489_s1 + $0x10] sm:$0xff]  ;;  %vm126_vm1 = vcmask 64512   ;;  %s432_s25 = smov 120  }
   0x5   :  { %v18_v5 = vld [vmem:[%s489_s1 + $0x18] sm:$0xff]  ;;  %v19_v6 = vld [vmem:[%s490_s2] sm:$0xff]  ;;  %s433_s1 = smov [#allocation2]  }
   0x6   :  { %390 = vmatprep.subr.mxu1 %v19_v6  ;;  %s339_s2 = sshll.u32 %s433_s1, 4  ;;  %s340_s2 = int_to_ptr.vmem [resolvable:$true] %s339_s2 }
   0x7   :  { %383 = vmatpush3.xpose.msk.msra.mxu0 %vm22_vm0, %v20_v1  ;;  %391 = vmatpush3.msra.mxu1 %v19_v6  ;;  %s410_s26 = scalar_lea.vmem %s340_s2, 1024  ;;  %p415_p1 = scmp.lt.s32.totalorder %s340_s2, %s340_s2 }
   0x8   :  { %398 = vmatprep.subr.mxu1 %v19_v6  ;;  %p411_p0 = scmp.ne.s32.totalorder %s340_s2, %s410_s26  ;;  %p416_p2 = scmp.lt.s32.totalorder %s410_s26, %s410_s26 }
   0xa   :  { %385 = vmatmul.mubr.msk.f32.vlgmr.msra.gmra.mxu0 %vm22_vm0, %v16_v3  ;;  %p417_p3 = por %p416_p2, %p415_p1 }
   0xb   :  { %387 = vmatprep.mubr.msk.f32.mxu0 %vm22_vm0, %v17_v4 }
   0xc   :  { %p418_p4 = pnand %p417_p3, %p411_p0 }
   0xe   :  { %388 = vmatmul.mubr.msk.f32.gmra.mxu0 %vm22_vm0, %v18_v5 }
  0xca   :  { %v386_v7 = vpop.f32.mrf.mxu0 }
  0xcc   :  { %v107_v8 = vpop.f32.mrf.mxu0 }
  0xcd   :  { %228 = vrot.lane.b32.xlu0 %v107_v8, %s432_s25  ;;  %392 = vmatprep.mubr.msk.f32.mxu1 %vm126_vm1, %v107_v8 }
  0xce   :  { %v389_v9 = vpop.f32.mrf.mxu0  ;;  %393 = vmatmul.mubr.msk.f32.vlgmr.msra.gmra.mxu1 %vm126_vm1, %v386_v7 }
  0xcf   :  { %399 = vmatpush3.msra.mxu1 %v19_v6 }
  0xd0   :  { %v117_v10 = vpop.f32.mrf.mxu0 }
  0xd1   :  { %230 = vrot.lane.b32.xlu0 %v386_v7, %s432_s25  ;;  %232 = vrot.lane.b32.xlu1 %v117_v10, %s432_s25 }
  0xd2   :  { %395 = vmatprep.mubr.msk.f32.mxu1 %vm126_vm1, %v117_v10 }
  0xd3   :  { %396 = vmatmul.mubr.msk.f32.gmra.mxu1 %vm126_vm1, %v389_v9 }
  0xd5   :  { %234 = vrot.lane.b32.xlu1 %v389_v9, %s432_s25 }
 0x13f   :  { %v229_v11 = vpop.permute.xlu0 %228 }
 0x140   :  { %400 = vmatprep.mubr.msk.f32.mxu1 %vm126_vm1, %v229_v11 }
 0x143   :  { %v231_v12 = vpop.permute.xlu0 %230  ;;  %v233_v13 = vpop.permute.xlu1 %232 }
 0x144   :  { %401 = vmatmul.mubr.msk.f32.vlgmr.msra.gmra.mxu1 %vm126_vm1, %v231_v12 }
 0x145   :  { %403 = vmatprep.mubr.msk.f32.mxu1 %vm126_vm1, %v233_v13 }
 0x147   :  { %v235_v14 = vpop.permute.xlu1 %234 }
 0x148   :  { %404 = vmatmul.mubr.msk.f32.gmra.mxu1 %vm126_vm1, %v235_v14 }
 0x18e   :  { %v394_v15 = vpop.f32.mrf.mxu1 }
 0x18f   :  { %225 = vst [vmem:[#allocation2 + $0x8] sm:$0xff] %v394_v15 }
 0x190   :  { %v205_v16 = vpop.f32.mrf.mxu1 }
 0x191   :  { %224 = vst [vmem:[#allocation2] sm:$0xff] %v205_v16 }
 0x193   :  { %v397_v17 = vpop.f32.mrf.mxu1 }
 0x194   :  { %227 = vst [vmem:[#allocation2 + $0x18] sm:$0xff] %v397_v17 }
 0x195   :  { %v215_v18 = vpop.f32.mrf.mxu1 }
 0x196   :  { %226 = vst [vmem:[#allocation2 + $0x10] sm:$0xff] %v215_v18 }
 0x204   :  { %v402_v19 = vpop.f32.mrf.mxu1 }
 0x205   :  { %331 = vst [vmem:[#allocation2 + $0x28] sm:$0xff] %v402_v19 }
 0x206   :  { %v310_v20 = vpop.f32.mrf.mxu1 }
 0x207   :  { %330 = vst [vmem:[#allocation2 + $0x20] sm:$0xff] %v310_v20 }
 0x208   :  { %v405_v21 = vpop.f32.mrf.mxu1 }
 0x209   :  { %333 = vst [vmem:[#allocation2 + $0x38] sm:$0xff] %v405_v21 }
 0x20a   :  { %v320_v22 = vpop.f32.mrf.mxu1 }
 0x20b   :  { %332 = vst [vmem:[#allocation2 + $0x30] sm:$0xff] %v320_v22 }
 0x20c   :  { %421 = shalt.err (!%p418_p4)
}
 0x20d   :  { %s434_s27 = smov 128   ;;  %s435_s28 = smov 8  }
 0x20e   :  { %345 = dma.vmem_to_hbm [thread:$0]  %s340_s2, 1024, %s491_s3, [#allocation3], %s434_s27, %s434_s27, %s435_s28  }
 0x20f   :  { %430 = dma.done.wait [#allocation3], 1024  }
 0x210   :  { %431 = vsyncadd [#allocation3], 4294966272 }
 0x211   :  { %349 = vsyncpa [#allocation3], 1 }

</bundles_post_ra>
